<compile_context>
chip_gen: v7x
topology: tpu7x:2x2x1
jax: 0.10.0
libtpu: 0.0.40
codegen_flags: <defaults>
</compile_context>

<pallas_src>
import functools

import jax
import jax.numpy as jnp
from jax import lax
from jax.experimental import pallas as pl
from jax.experimental.pallas import tpu as pltpu


def conv_block_kernel(xs_ref, w_ref, gamma_ref, beta_ref, mask_ref, out_ref,
                      *, owp, lout, inv_p):
    """One (batch, Cout-tile) grid step.

    xs_ref   : (1, 4*Cin, Pp)   bf16  space-to-depth input, flat padded spatial
    w_ref    : (4, Ct, 4*Cin)   bf16  one (Ct, 4*Cin) weight slab per 2x2 sub-tap
    gamma_ref: (Ct, 1)          f32   InstanceNorm affine weight
    beta_ref : (Ct, 1)          f32   InstanceNorm affine bias
    mask_ref : (1, Lout)        f32   1.0 on valid output columns, 0.0 on pad col
    out_ref  : (1, Ct, Lout)    out dtype (flat (OH, OWp) layout, pad col kept)
    """
    xs = xs_ref[0]                                   # (4*Cin, Pp) bf16, loaded once

    # Convolution: 4 MXU matmuls (the 4x4 stride-2 kernel decomposes into four
    # 2x2 sub-taps after space-to-depth); lane-offset slices align the partial
    # results onto the flat (OH, OWp) output grid; f32 accumulation.
    conv = None
    for ka in range(2):
        for kb in range(2):
            y = jnp.dot(w_ref[2 * ka + kb], xs,
                        preferred_element_type=jnp.float32)       # (Ct, Pp)
            off = ka * owp + kb
            y = y[:, off:off + lout]                               # (Ct, Lout)
            conv = y if conv is None else conv + y

    # InstanceNorm2d: per-channel stats over the valid spatial positions only.
    # Two-pass (mean, then centered variance) to avoid cancellation; eps=1e-5,
    # biased variance (matches PyTorch InstanceNorm2d).
    mask = mask_ref[...]                                           # (1, Lout)
    mean = jnp.sum(conv * mask, axis=1, keepdims=True) * inv_p     # (Ct, 1)
    cen = (conv - mean) * mask
    var = jnp.sum(cen * cen, axis=1, keepdims=True) * inv_p
    inv_std = lax.rsqrt(var + 1e-5)                                # EUP slot

    # Affine folded into one scale+shift, LeakyReLU(0.2) as a single maximum.
    scale = gamma_ref[...] * inv_std                               # (Ct, 1)
    shift = beta_ref[...] - mean * scale                           # (Ct, 1)
    y_out = conv * scale + shift                                   # (Ct, Lout)
    out_ref[0] = jnp.maximum(y_out, 0.2 * y_out).astype(out_ref.dtype)


def conv_block_forward(x, weight, bias, gamma, beta, k=4, s=2, p=1,
                       out_dtype=jnp.bfloat16, cout_tile=None):
    """x: (N, Cin, H, W) NCHW; weight: (Cout, Cin, 4, 4); returns NCHW output.

    `bias` is accepted for nn.Conv2d API parity but intentionally unused: a
    per-channel bias added before InstanceNorm is cancelled exactly by the
    mean subtraction, so it never affects the output.
    """
    del bias
    assert (k, s, p) == (4, 2, 1), "kernel specialised to the module defaults"
    N, Cin, H, W = x.shape
    assert H % 2 == 0 and W % 2 == 0, "stride-2 kernel expects even H, W"
    Cout = weight.shape[0]

    OH, OW = H // 2, W // 2
    OWp = OW + 1        # one pad column kept in the flat output layout
    OHp = OH + 2        # p=1 top pad + p=1 bottom pad + 2 extra zero rows so all
                        # four lane-shifted partial sums stay in-bounds
    C4 = 4 * Cin
    Pp = OHp * OWp      # flat padded spatial length seen by the matmuls
    Lout = OH * OWp     # flat output length (valid rows, pad column included)

    # ---- wrapper-side relayout: NO im2col duplication, one pass over x ------
    # bf16 cast BEFORE the relayout so the relaid tensor is half-width in HBM.
    xb = x.astype(jnp.bfloat16)
    xp = jnp.pad(xb, ((0, 0), (0, 0), (1, 3), (1, 1)))     # (N, Cin, 2*OHp, 2*OWp)
    xs = xp.reshape(N, Cin, OHp, 2, OWp, 2)
    xs = xs.transpose(0, 3, 5, 1, 2, 4)                    # (N, rh, rw, Cin, OHp, OWp)
    xs = xs.reshape(N, C4, Pp)                             # channels (rh, rw, c), flat spatial

    # weight (Cout, Cin, 4, 4): kh = 2a+rh, kw = 2b+rw -> 4 sub-kernels (a, b)
    # of shape (Cout, 4*Cin), channel order matching xs.
    w6 = weight.reshape(Cout, Cin, 2, 2, 2, 2)             # (o, c, a, rh, b, rw)
    w6 = w6.transpose(2, 4, 0, 3, 5, 1)                    # (a, b, o, rh, rw, c)
    w_mat = w6.reshape(4, Cout, C4).astype(jnp.bfloat16)

    g_col = gamma.reshape(Cout, 1).astype(jnp.float32)
    b_col = beta.reshape(Cout, 1).astype(jnp.float32)
    colmask = (jnp.arange(Lout, dtype=jnp.int32) % OWp != OW)
    colmask = colmask.astype(jnp.float32).reshape(1, Lout)

    # Cout tiling: second 'parallel' grid axis (v7x megacore even at N == 1)
    # and smaller weight / output blocks. Per-channel InstanceNorm stats make
    # splitting Cout reduction-safe.
    if cout_tile is None:
        cout_tile = Cout
        for cand in (256, 128):
            if Cout % cand == 0:
                cout_tile = cand
                break
    assert Cout % cout_tile == 0
    nj = Cout // cout_tile

    out_isize = jnp.dtype(out_dtype).itemsize
    # VMEM budget: double-buffered blocks + f32 in-kernel temporaries, with slack.
    est = (2 * (C4 * Pp * 2 + 4 * cout_tile * C4 * 2
                + cout_tile * Lout * out_isize + Lout * 4 + 2 * cout_tile * 4)
           + 6 * cout_tile * Pp * 4)
    vmem_limit = int(min(max(est * 3 // 2, 32 * 1024 * 1024), 128 * 1024 * 1024))

    cost = pl.CostEstimate(
        flops=2 * N * Cout * C4 * Pp * 4,
        transcendentals=N * Cout,
        bytes_accessed=(N * C4 * Pp * 2 + 4 * Cout * C4 * 2
                        + N * Cout * Lout * out_isize + Lout * 4 + 8 * Cout))

    kern = functools.partial(conv_block_kernel, owp=OWp, lout=Lout,
                             inv_p=1.0 / float(OH * OW))

    out = pl.pallas_call(
        kern,
        out_shape=jax.ShapeDtypeStruct((N, Cout, Lout), out_dtype),
        grid_spec=pltpu.PrefetchScalarGridSpec(
            num_scalar_prefetch=0,
            grid=(N, nj),
            in_specs=[
                pl.BlockSpec((1, C4, Pp), lambda n, j: (n, 0, 0)),
                pl.BlockSpec((4, cout_tile, C4), lambda n, j: (0, j, 0)),
                pl.BlockSpec((cout_tile, 1), lambda n, j: (j, 0)),
                pl.BlockSpec((cout_tile, 1), lambda n, j: (j, 0)),
                pl.BlockSpec((1, Lout), lambda n, j: (0, 0)),
            ],
            out_specs=pl.BlockSpec((1, cout_tile, Lout), lambda n, j: (n, j, 0)),
        ),
        compiler_params=pltpu.CompilerParams(
            dimension_semantics=("parallel", "parallel"),
            vmem_limit_bytes=vmem_limit),
        cost_estimate=cost,
    )(xs, w_mat, g_col, b_col, colmask)

    # (N, Cout, OH*OWp) -> (N, Cout, OH, OWp) -> drop the single pad column.
    return out.reshape(N, Cout, OH, OWp)[:, :, :, :OW]


def reference_forward(x, weight, bias, gamma, beta, k=4, s=2, p=1):
    """Pure-JAX f32 reference matching the PyTorch module."""
    conv = lax.conv_general_dilated(
        x, weight, window_strides=(s, s), padding=((p, p), (p, p)),
        dimension_numbers=("NCHW", "OIHW", "NCHW"))
    conv = conv + bias.reshape(1, -1, 1, 1)
    mean = jnp.mean(conv, axis=(2, 3), keepdims=True)
    var = jnp.mean((conv - mean) ** 2, axis=(2, 3), keepdims=True)
    xhat = (conv - mean) * lax.rsqrt(var + 1e-5)
    y = xhat * gamma.reshape(1, -1, 1, 1) + beta.reshape(1, -1, 1, 1)
    return jnp.where(y >= 0, y, 0.2 * y)


if __name__ == "__main__":
    # Small shapes consistent with the module: batch=2, in_dim=4, out_dim=8,
    # spatial=16 -> output spatial 8 with (k=4, s=2, p=1).
    N, Cin, H, W = 2, 4, 16, 16
    Cout, k, s, p = 8, 4, 2, 1

    key = jax.random.PRNGKey(0)
    kx, kw, kb, kg, kbe = jax.random.split(key, 5)

    x = jax.random.normal(kx, (N, Cin, H, W), dtype=jnp.float32)
    fan_in = Cin * k * k
    weight = jax.random.normal(kw, (Cout, Cin, k, k), dtype=jnp.float32) / jnp.sqrt(fan_in)
    bias = jax.random.normal(kb, (Cout,), dtype=jnp.float32) * 0.1
    gamma = 1.0 + 0.1 * jax.random.normal(kg, (Cout,), dtype=jnp.float32)
    beta = 0.1 * jax.random.normal(kbe, (Cout,), dtype=jnp.float32)

    ref = reference_forward(x, weight, bias, gamma, beta, k=k, s=s, p=p)

    # Default path: bf16 output (halves the store stream feeding the next block).
    out_bf16 = conv_block_forward(x, weight, bias, gamma, beta, k=k, s=s, p=p)
    out_bf16 = jax.block_until_ready(out_bf16)
    assert out_bf16.shape == (N, Cout, H // 2, W // 2), out_bf16.shape
    err_bf16 = float(jnp.max(jnp.abs(out_bf16.astype(jnp.float32) - ref)))
    assert err_bf16 < 7e-2, err_bf16

    # f32 output path for a tighter numerical check.
    out_f32 = conv_block_forward(x, weight, bias, gamma, beta, k=k, s=s, p=p,
                                 out_dtype=jnp.float32)
    out_f32 = jax.block_until_ready(out_f32)
    err_f32 = float(jnp.max(jnp.abs(out_f32 - ref)))
    assert jnp.allclose(out_f32, ref, atol=3e-2, rtol=3e-2), err_f32

    print("KERNEL_OK")
</pallas_src>

<mosaic_0001>
module attributes {stable_mosaic.version = 11 : i64} {
  func.func @conv_block_kernel(%arg0: i32, %arg1: i32, %arg2: memref<1x16x90xbf16, #tpu.memory_space<vmem>>, %arg3: memref<4x8x16xbf16, #tpu.memory_space<vmem>>, %arg4: memref<8x1xf32, #tpu.memory_space<vmem>>, %arg5: memref<8x1xf32, #tpu.memory_space<vmem>>, %arg6: memref<1x72xf32, #tpu.memory_space<vmem>>, %arg7: memref<1x8x72xbf16, #tpu.memory_space<vmem>>) attributes {dimension_semantics = [#tpu.dimension_semantics<parallel>, #tpu.dimension_semantics<parallel>], iteration_bounds = array<i64: 2, 1>, scalar_prefetch = 0 : i64, scratch_operands = 0 : i64, tpu.core_type = #tpu.core_type<tc>, window_params = [{transform_indices = @transform_0, window_bounds = array<i64: 1, 16, 90>}, {transform_indices = @transform_1, window_bounds = array<i64: 4, 8, 16>}, {transform_indices = @transform_2, window_bounds = array<i64: 8, 1>}, {transform_indices = @transform_3, window_bounds = array<i64: 8, 1>}, {pipeline_mode = #tpu.pipeline_mode<synchronous>, transform_indices = @transform_4, window_bounds = array<i64: 1, 72>}, {transform_indices = @transform_5, window_bounds = array<i64: 1, 8, 72>}]} {
    %c0 = arith.constant 0 : index
    %c0_0 = arith.constant 0 : index
    %c0_1 = arith.constant 0 : index
    %0 = vector.load %arg2[%c0, %c0_0, %c0_1] : memref<1x16x90xbf16, #tpu.memory_space<vmem>>, vector<1x16x90xbf16>
    %1 = vector.shape_cast %0 : vector<1x16x90xbf16> to vector<16x90xbf16>
    %c0_2 = arith.constant 0 : index
    %c0_3 = arith.constant 0 : index
    %c0_4 = arith.constant 0 : index
    %2 = vector.load %arg3[%c0_2, %c0_3, %c0_4] : memref<4x8x16xbf16, #tpu.memory_space<vmem>>, vector<1x8x16xbf16>
    %3 = vector.shape_cast %2 : vector<1x8x16xbf16> to vector<8x16xbf16>
    %cst = arith.constant dense<0.000000e+00> : vector<8x90xf32>
    %4 = tpu.matmul %3, %1, %cst {dimension_numbers = #tpu.dot_dimension_numbers<[1], [0], [0], [1], [0, 0, 1, 1], [], []>} : vector<8x16xbf16>, vector<16x90xbf16>, vector<8x90xf32> -> vector<8x90xf32>
    %5 = vector.extract_strided_slice %4 {offsets = [0, 0], sizes = [8, 72], strides = [1, 1]} : vector<8x90xf32> to vector<8x72xf32>
    %c1 = arith.constant 1 : index
    %c0_5 = arith.constant 0 : index
    %c0_6 = arith.constant 0 : index
    %6 = vector.load %arg3[%c1, %c0_5, %c0_6] : memref<4x8x16xbf16, #tpu.memory_space<vmem>>, vector<1x8x16xbf16>
    %7 = vector.shape_cast %6 : vector<1x8x16xbf16> to vector<8x16xbf16>
    %cst_7 = arith.constant dense<0.000000e+00> : vector<8x90xf32>
    %8 = tpu.matmul %7, %1, %cst_7 {dimension_numbers = #tpu.dot_dimension_numbers<[1], [0], [0], [1], [0, 0, 1, 1], [], []>} : vector<8x16xbf16>, vector<16x90xbf16>, vector<8x90xf32> -> vector<8x90xf32>
    %9 = vector.extract_strided_slice %8 {offsets = [0, 1], sizes = [8, 72], strides = [1, 1]} : vector<8x90xf32> to vector<8x72xf32>
    %10 = arith.addf %5, %9 : vector<8x72xf32>
    %c2 = arith.constant 2 : index
    %c0_8 = arith.constant 0 : index
    %c0_9 = arith.constant 0 : index
    %11 = vector.load %arg3[%c2, %c0_8, %c0_9] : memref<4x8x16xbf16, #tpu.memory_space<vmem>>, vector<1x8x16xbf16>
    %12 = vector.shape_cast %11 : vector<1x8x16xbf16> to vector<8x16xbf16>
    %cst_10 = arith.constant dense<0.000000e+00> : vector<8x90xf32>
    %13 = tpu.matmul %12, %1, %cst_10 {dimension_numbers = #tpu.dot_dimension_numbers<[1], [0], [0], [1], [0, 0, 1, 1], [], []>} : vector<8x16xbf16>, vector<16x90xbf16>, vector<8x90xf32> -> vector<8x90xf32>
    %14 = vector.extract_strided_slice %13 {offsets = [0, 9], sizes = [8, 72], strides = [1, 1]} : vector<8x90xf32> to vector<8x72xf32>
    %15 = arith.addf %10, %14 : vector<8x72xf32>
    %c3 = arith.constant 3 : index
    %c0_11 = arith.constant 0 : index
    %c0_12 = arith.constant 0 : index
    %16 = vector.load %arg3[%c3, %c0_11, %c0_12] : memref<4x8x16xbf16, #tpu.memory_space<vmem>>, vector<1x8x16xbf16>
    %17 = vector.shape_cast %16 : vector<1x8x16xbf16> to vector<8x16xbf16>
    %cst_13 = arith.constant dense<0.000000e+00> : vector<8x90xf32>
    %18 = tpu.matmul %17, %1, %cst_13 {dimension_numbers = #tpu.dot_dimension_numbers<[1], [0], [0], [1], [0, 0, 1, 1], [], []>} : vector<8x16xbf16>, vector<16x90xbf16>, vector<8x90xf32> -> vector<8x90xf32>
    %19 = vector.extract_strided_slice %18 {offsets = [0, 10], sizes = [8, 72], strides = [1, 1]} : vector<8x90xf32> to vector<8x72xf32>
    %20 = arith.addf %15, %19 : vector<8x72xf32>
    %c0_14 = arith.constant 0 : index
    %c0_15 = arith.constant 0 : index
    %21 = vector.load %arg6[%c0_14, %c0_15] : memref<1x72xf32, #tpu.memory_space<vmem>>, vector<1x72xf32>
    %22 = vector.broadcast %21 : vector<1x72xf32> to vector<8x72xf32>
    %23 = arith.mulf %20, %22 : vector<8x72xf32>
    %cst_16 = arith.constant dense<0.000000e+00> : vector<8xf32>
    %24 = vector.multi_reduction <add>, %23, %cst_16 [1] : vector<8x72xf32> to vector<8xf32>
    %25 = vector.shape_cast %24 : vector<8xf32> to vector<8x1xf32>
    %cst_17 = arith.constant 1.562500e-02 : f32
    %26 = vector.broadcast %cst_17 : f32 to vector<8x1xf32>
    %27 = arith.mulf %25, %26 : vector<8x1xf32>
    %28 = vector.broadcast %27 : vector<8x1xf32> to vector<8x72xf32>
    %29 = arith.subf %20, %28 : vector<8x72xf32>
    %30 = vector.broadcast %21 : vector<1x72xf32> to vector<8x72xf32>
    %31 = arith.mulf %29, %30 : vector<8x72xf32>
    %32 = arith.mulf %31, %31 : vector<8x72xf32>
    %cst_18 = arith.constant dense<0.000000e+00> : vector<8xf32>
    %33 = vector.multi_reduction <add>, %32, %cst_18 [1] : vector<8x72xf32> to vector<8xf32>
    %34 = vector.shape_cast %33 : vector<8xf32> to vector<8x1xf32>
    %cst_19 = arith.constant 1.562500e-02 : f32
    %35 = vector.broadcast %cst_19 : f32 to vector<8x1xf32>
    %36 = arith.mulf %34, %35 : vector<8x1xf32>
    %cst_20 = arith.constant 9.99999974E-6 : f32
    %37 = vector.broadcast %cst_20 : f32 to vector<8x1xf32>
    %38 = arith.addf %36, %37 : vector<8x1xf32>
    %39 = math.rsqrt %38 : vector<8x1xf32>
    %c0_21 = arith.constant 0 : index
    %c0_22 = arith.constant 0 : index
    %40 = vector.load %arg4[%c0_21, %c0_22] : memref<8x1xf32, #tpu.memory_space<vmem>>, vector<8x1xf32>
    %41 = arith.mulf %40, %39 : vector<8x1xf32>
    %c0_23 = arith.constant 0 : index
    %c0_24 = arith.constant 0 : index
    %42 = vector.load %arg5[%c0_23, %c0_24] : memref<8x1xf32, #tpu.memory_space<vmem>>, vector<8x1xf32>
    %43 = arith.mulf %27, %41 : vector<8x1xf32>
    %44 = arith.subf %42, %43 : vector<8x1xf32>
    %45 = vector.broadcast %41 : vector<8x1xf32> to vector<8x72xf32>
    %46 = arith.mulf %20, %45 : vector<8x72xf32>
    %47 = vector.broadcast %44 : vector<8x1xf32> to vector<8x72xf32>
    %48 = arith.addf %46, %47 : vector<8x72xf32>
    %cst_25 = arith.constant 2.000000e-01 : f32
    %49 = vector.broadcast %cst_25 : f32 to vector<8x72xf32>
    %50 = arith.mulf %49, %48 : vector<8x72xf32>
    %51 = arith.maximumf %48, %50 : vector<8x72xf32>
    %52 = arith.truncf %51 : vector<8x72xf32> to vector<8x72xbf16>
    %c0_26 = arith.constant 0 : index
    %c0_27 = arith.constant 0 : index
    %c0_28 = arith.constant 0 : index
    %53 = vector.load %arg7[%c0_26, %c0_27, %c0_28] : memref<1x8x72xbf16, #tpu.memory_space<vmem>>, vector<1x8x72xbf16>
    %54 = vector.shape_cast %53 : vector<1x8x72xbf16> to vector<8x72xbf16>
    %55 = vector.shape_cast %52 : vector<8x72xbf16> to vector<1x8x72xbf16>
    tpu.vector_store %arg7[%c0_26, %c0_27, %c0_28], %55 {strides = array<i32>} : memref<1x8x72xbf16, #tpu.memory_space<vmem>>, vector<1x8x72xbf16>,
    return
  }
  func.func @transform_0(%arg0: i32, %arg1: i32) -> (i32, i32, i32) {
    %c0_i32 = arith.constant 0 : i32
    %c0_i32_0 = arith.constant 0 : i32
    %c0_i32_1 = arith.constant 0 : i32
    return %arg0, %c0_i32, %c0_i32_0 : i32, i32, i32
  }
  func.func @transform_1(%arg0: i32, %arg1: i32) -> (i32, i32, i32) {
    %c0_i32 = arith.constant 0 : i32
    %c0_i32_0 = arith.constant 0 : i32
    %c0_i32_1 = arith.constant 0 : i32
    return %c0_i32, %arg1, %c0_i32_0 : i32, i32, i32
  }
  func.func @transform_2(%arg0: i32, %arg1: i32) -> (i32, i32) {
    %c0_i32 = arith.constant 0 : i32
    %c0_i32_0 = arith.constant 0 : i32
    return %arg1, %c0_i32 : i32, i32
  }
  func.func @transform_3(%arg0: i32, %arg1: i32) -> (i32, i32) {
    %c0_i32 = arith.constant 0 : i32
    %c0_i32_0 = arith.constant 0 : i32
    return %arg1, %c0_i32 : i32, i32
  }
  func.func @transform_4(%arg0: i32, %arg1: i32) -> (i32, i32) {
    %c0_i32 = arith.constant 0 : i32
    %c0_i32_0 = arith.constant 0 : i32
    %c0_i32_1 = arith.constant 0 : i32
    return %c0_i32, %c0_i32_0 : i32, i32
  }
  func.func @transform_5(%arg0: i32, %arg1: i32) -> (i32, i32, i32) {
    %c0_i32 = arith.constant 0 : i32
    %c0_i32_0 = arith.constant 0 : i32
    return %arg0, %arg1, %c0_i32 : i32, i32, i32
  }
}

</mosaic_0001>

<bundles_post_ra>
// kernel: tpu_custom_call.1
= control target key start
LH: loop header
LB: loop body
LE: loop exit
PB: predicated region body
PF: predicated region fallthrough
CT: control target
= control target key end

     0   :  { %10 = vsyncpa [#allocation3], 0  ;;  %s1117_s0 = inlined_call_operand.vmem [shape: bf16[2,16,90], index: 0, kind: input, shape index: {}]   ;;  %s1118_s1 = inlined_call_operand.hbm [shape: bf16[4,8,16], index: 1, kind: input, shape index: {}]   ;;  %s1119_s2 = inlined_call_operand.vmem [shape: f32[8,1], index: 2, kind: input, shape index: {}]   ;;  %s1120_s3 = inlined_call_operand.vmem [shape: f32[8,1], index: 3, kind: input, shape index: {}]   ;;  %s1121_s4 = inlined_call_operand.vmem [shape: f32[1,72], index: 4, kind: input, shape index: {}]   ;;  %s1122_s5 = inlined_call_operand.hbm [shape: bf16[2,8,72], index: 5, kind: output, shape index: {}]  }
   0x1   :  { %11 = vsyncpa [#allocation4], 0 }
   0x2   :  { %13 = vsyncpa [#allocation4 + $0x1], 0  ;;  %s954_s18 = smov 0   ;;  %s956_s19 = smov 0  }
   0x3   :  { %s958_s20 = smov 0   ;;  %s960_s21 = smov 0  }
   0x4   :  { %s962_s22 = smov 0   ;;  %s964_s23 = smov 0  }
   0x5 LB: > { %s668_s24 = sadd.s32 4294967295, %s912_s23   ;;  %s669_s25 = sadd.s32 4294967294, %s912_s23   ;;  %s912_s23 = sphi %s964_s23, %s19_s23   ;;  %s908_s22 = sphi %s962_s22, %s1140_s22   ;;  %s904_s21 = sphi %s960_s21, %s1139_s21   ;;  %s900_s20 = sphi %s958_s20, %s1138_s20   ;;  %s896_s19 = sphi %s956_s19, %s1137_s19   ;;  %s892_s18 = sphi %s954_s18, %s1136_s18  }
   0x6   : > { %s31_s26 = sadd.s32 1, %s908_s22  ;;  %s165_s27 = sadd.s32 1, %s900_s20 }
   0x7   : > { %p33_p0 = scmp.ge.s32.totalorder %s31_s26, 2  ;;  %p175_p1 = scmp.ne.s32.totalorder %s900_s20, %s896_s19 }
   0x8   : > { %p176_p2 = scmp.eq.s32.totalorder %s668_s24, 1  ;;  %p181_p3 = scmp.ne.s32.totalorder %s896_s19, %s892_s18 }
   0x9   : > { %s1142_s26 = smov (%p33_p0, %s31_s26), 0  ;;  %p182_p5 = scmp.eq.s32.totalorder %s669_s25, 1 }
   0xa   : > { %p994_p4 = por %p176_p2, %p175_p1  ;;  %s160_s29 = ssub.s32 %s908_s22, %s1142_s26 }
   0xb   : > { %p670_p6 = scmp.ge.s32.totalorder %s912_s23, 1  ;;  %p163_p7 = scmp.eq.s32.totalorder %s160_s29, 0 }
   0xc   : > { %s1127_s28 = scalar_select %p994_p4, 1, 0 }
   0xd   : > { %p1001_p8 = por %p182_p5, %p181_p3  ;;  %p189_p9 = scmp.lt.s32.totalorder %s912_s23, 3 }
   0xe   : > { %s1007_s6 = scalar_select %p163_p7, %s900_s20, %s165_s27  }
   0xf   : > { %s1128_s30 = scalar_select %p1001_p8, 1, 0 }
  0x10   : > { %p1009_p10 = pnand %p670_p6, %p189_p9  ;;  %p1013_p11 = scmp.eq.s32.totalorder %s668_s24, 0 }
  0x11   : > { %s914_s9 = smov [#allocation2]   ;;  %s802_s14 = scalar_lea.hbm %s1118_s1, 256 }
  0x12   : > { %s1129_s7 = scalar_select %p1009_p10, 1, 0 }
  0x13   : > { %s1130_s8 = scalar_select %p1013_p11, 1, 0 }
  0x14   : > { %p729_p12 = pneg %p1009_p10  ;;  %s203_s10 = sshll.u32 %s914_s9, 4  ;;  %s204_s10 = int_to_ptr.vmem [resolvable:$true] %s203_s10 }
  0x15   : > { %p803_p0 = scmp.ne.s32.totalorder %s1118_s1, %s802_s14  ;;  %p809_p5 = scmp.lt.u32.totalorder %s802_s14, %s1118_s1 }
  0x16   : > { %p1021_p13 = pnand %p1013_p11, %p729_p12 }
  0x18   : > { %p804_p1 = pneg %p1021_p13 }
  0x1a   : > { %p805_p2 = pnand %p804_p1, %p803_p0 }
  0x1c   : > { %p806_p3 = pneg %p805_p2 }
  0x1e   : > { %p811_p6 = pnand %p809_p5, %p806_p3 }
  0x20   : > { %814 = shalt.err (!%p811_p6)
}
  0x21   : > { %s815_s25 = scalar_lea.vmem %s204_s10, 256  ;;  %p823_p8 = scmp.lt.s32.totalorder %s204_s10, %s204_s10 }
  0x22   : > { %p816_p7 = scmp.ne.s32.totalorder %s204_s10, %s815_s25  ;;  %p824_p4 = scmp.lt.s32.totalorder %s815_s25, %s815_s25 }
  0x24   : > { %p818_p9 = pnand %p816_p7, %p804_p1  ;;  %p825_p11 = por %p824_p4, %p823_p8 }
  0x26   : > { %p819_p12 = pneg %p818_p9 }
  0x28   : > { %p826_p10 = pnand %p825_p11, %p819_p12 }
  0x2a   : > { %829 = shalt.err (!%p826_p10)
}
  0x2b   : > { %s915_s27 = smov 64   ;;  %s916_s29 = smov 4  }
  0x2c   : > { %732 = dma.hbm_to_vmem [thread:$0]  (!%p1021_p13), %s1118_s1, 256, %s204_s10, [#allocation3], %s915_s27, %s915_s27, %s916_s29  }
  0x2d   : > { %p1132_p0 = scmp.ne.s32.totalorder %s1129_s7, 0 }
  0x2e   : > { %p1133_p2 = scmp.ne.s32.totalorder (!%p1132_p0), %s1130_s8, 0 }
  0x2f   : > { %244 = sbr.rel (%p1132_p0) target bundleno = 871 (0x367), region = 40 }
  0x36   : > { %883 = dma.done.wait (%p1133_p2), [#allocation3], 256  }
  0x37   : > { %885 = vsyncadd (%p1133_p2), [#allocation3], 4294967040  ;;  %p280_p4 = scmp.lt.s32.totalorder %s904_s21, 1  ;;  %v917_v0 = vmov 0.0   ;;  %vm918_vm0 = vmmov 0   ;;  %vm303_vm1 = vcmask 130048  }
  0x38   : > { %699 = vmatprep.subr.bf16.mxu0 %v917_v0  ;;  %705 = vmatprep.subr.bf16.mxu1 %v917_v0  ;;  %v296_v2 = vld [vmem:[#allocation2] sm:$0xf]  ;;  %v348_v3 = vld [vmem:[#allocation2 + $0x4] sm:$0xf]  ;;  %v398_v4 = vld [vmem:[#allocation2 + $0x8] sm:$0xf] }
  0x39   : > { %s281_s11 = scalar_select %p280_p4, %s904_s21, 1  ;;  %701 = vmatprep.mubr.msk.bf16.mxu0 %vm918_vm0, %v917_v0  ;;  %707 = vmatprep.mubr.msk.bf16.mxu1 %vm918_vm0, %v917_v0  ;;  %v448_v5 = vld [vmem:[#allocation2 + $0xc] sm:$0xf]  ;;  %v685_v27 = vld [vmem:[%s1121_s4] ss:$0 sm:$0xff]  ;;  %vm505_vm2 = vcmask 588800  }
  0x3a   : > { %s919_s8 = smov 127   ;;  %s920_s15 = smov 119   ;;  %v922_v37 = vmov 0   ;;  %v519_v41 = vld [vmem:[%s1119_s2] sm:$0xff]  ;;  %vm539_vm3 = vcmask 584704  }
  0x3b   : > { %s690_s7 = sshll.u32 %s281_s11, 3  ;;  %s921_s16 = smov 118   ;;  %797 = vset.pattern.permute.xlu0 %v922_v37  ;;  %798 = vset.pattern.permute.xlu1 %v922_v37  ;;  %v521_v44 = vld [vmem:[%s1120_s3] sm:$0xff] }
  0x3c   : > { %s284_s14 = scalar_lea.vmem %s1117_s0, %s690_s7  ;;  %s277_s12 = sand.u32 1, %s896_s19  }
  0x3d   : > { %v799_v1 = vld [vmem:[%s284_s14] sm:$0xff]   ;;  %s677_s11 = sshll.u32 %s277_s12, 2  ;;  %s687_s7 = sshll.u32 %s904_s21, 6 }
  0x3e   : > { %700 = vmatpush3.bf16.msra.mxu0 %v799_v1  ;;  %706 = vmatpush3.bf16.msra.mxu1 %v799_v1  ;;  %s279_s10 = scalar_lea.vmem [#allocation5], %s677_s11  ;;  %p1134_p10 = scmp.ne.s32.totalorder %s1127_s28, 0 }
  0x3f   : > { %711 = vmatprep.subr.bf16.mxu0 %v917_v0  ;;  %717 = vmatprep.subr.bf16.mxu1 %v917_v0  ;;  %s556_s13 = sshll.u32 %s279_s10, 4  ;;  %s923_s21 = smov [#allocation5]   ;;  %s1072_s13 = int_to_ptr.vmem [resolvable:$true] %s556_s13 }
  0x40   : > { %s830_s17 = scalar_lea.vmem %s1072_s13, 64  ;;  %s834_s24 = sshll.u32 %s923_s21, 4  ;;  %s835_s24 = int_to_ptr.vmem [resolvable:$false] %s834_s24 }
  0x41   : > { %702 = vmatmul.mubr.msk.bf16.vlgmr.msra.gmra.mrb[0].mxu0 %vm303_vm1, %v296_v2  ;;  %708 = vmatmul.mubr.msk.bf16.vlgmr.msra.gmra.mrb[0].mxu1 %vm303_vm1, %v348_v3  ;;  %p831_p8 = scmp.ne.s32.totalorder %s1072_s13, %s830_s17  ;;  %s836_s25 = scalar_lea.vmem %s835_s24, 128 }
  0x42   : > { %712 = vmatpush3.bf16.msra.mxu0 %v799_v1  ;;  %718 = vmatpush3.bf16.msra.mxu1 %v799_v1  ;;  %p837_p1 = scmp.lt.s32.totalorder %s1072_s13, %s835_s24  ;;  %p838_p3 = scmp.lt.s32.totalorder %s836_s25, %s830_s17 }
  0x43   : > { %713 = vmatprep.mubr.msk.bf16.mxu0 %vm918_vm0, %v917_v0  ;;  %719 = vmatprep.mubr.msk.bf16.mxu1 %vm918_vm0, %v917_v0  ;;  %p832_p11 = pnand %p831_p8, %p1134_p10 }
  0x44   : > { %p839_p5 = por %p838_p3, %p837_p1 }
  0x45   : > { %p833_p13 = pneg %p832_p11 }
  0x47   : > { %p840_p6 = pnand %p839_p5, %p833_p13 }
  0x49   : > { %714 = vmatmul.mubr.msk.bf16.vlgmr.msra.gmra.mrb[4].mxu0 %vm303_vm1, %v398_v4  ;;  %720 = vmatmul.mubr.msk.bf16.vlgmr.msra.gmra.mrb[4].mxu1 %vm303_vm1, %v448_v5 }
 0x114   : > { %v341_v6 = vpop.f32.mrb[0].mxu0  ;;  %v386_v7 = vpop.f32.mrb[0].mxu1 }
 0x115   : > { %393 = vrot.lane.b32.xlu0 %v386_v7, %s919_s8  ;;  %v703_v8 = vpop.f32.mrb[1].mxu0  ;;  %v709_v9 = vpop.f32.mrb[1].mxu1 }
 0x116   : > { %v344_v10 = vpop.f32.mrb[2].mxu0  ;;  %v389_v11 = vpop.f32.mrb[2].mxu1 }
 0x117   : > { %v704_v12 = vpop.f32.mrb[3].mxu0  ;;  %v710_v13 = vpop.f32.mrb[3].mxu1 }
 0x11c   : > { %v436_v14 = vpop.f32.mrb[4].mxu0  ;;  %v486_v15 = vpop.f32.mrb[4].mxu1 }
 0x11d   : > { %v721_v16 = vpop.f32.mrb[5].mxu1  ;;  %443 = vrot.lane.b32.xlu0 %v436_v14, %s920_s15  ;;  %v715_v17 = vpop.f32.mrb[5].mxu0  ;;  %493 = vrot.lane.b32.xlu1 %v486_v15, %s921_s16  ;;  %s1070_s15 = scalar_lea.hbm %s1122_s5, %s687_s7  ;;  %s542_s16 = scalar_lea.sflag [#allocation4], %s277_s12 }
 0x11e   : > { %v439_v18 = vpop.f32.mrb[6].mxu0  ;;  %v489_v19 = vpop.f32.mrb[6].mxu1 }
 0x11f   : > { %v716_v20 = vpop.f32.mrb[7].mxu0  ;;  %v722_v21 = vpop.f32.mrb[7].mxu1 }
 0x187   : > { %v394_v22 = vpop.permute.xlu0 %393 }
 0x188   : > { %v396_v23 = vadd.f32 %v394_v22, %v341_v6 }
 0x18f   : > { %v444_v24 = vpop.permute.xlu0 %443  ;;  %v494_v25 = vpop.permute.xlu1 %493 }
 0x190   : > { %v446_v26 = vadd.f32 %v444_v24, %v396_v23 }
 0x192   : > { %v496_v28 = vadd.f32 %v494_v25, %v446_v26 }
 0x194   : > { %v504_v29 = vmul.f32 %v685_v27, %v496_v28 }
 0x196   : > { %v506_v30 = vsel %vm505_vm2, %v504_v29, 0.0 }
 0x197   : > { %507 = vadd.xlane.f32.xlu1 %v506_v30 }
 0x224   : > { %v508_v31 = vpop.xlane.xlu1 %507 }
 0x225   : > { %v509_v32 = vmul.f32 0.015625, %v508_v31 }
 0x227   : > { %v510_v33 = vsub.f32 %v496_v28, %v509_v32 }
 0x229   : > { %v511_v34 = vmul.f32 %v685_v27, %v510_v33 }
 0x22b   : > { %v512_v35 = vmul.f32 %v511_v34, %v511_v34 }
 0x22d   : > { %v513_v36 = vsel %vm505_vm2, %v512_v35, 0.0 }
 0x22e   : > { %514 = vadd.xlane.f32.xlu0 %v513_v36 }
 0x2bb   : > { %v515_v38 = vpop.xlane.xlu0 %514 }
 0x2bc   : > { %v516_v39 = vmul.f32 0.015625, %v515_v38 }
 0x2be   : > { %v517_v40 = vadd.f32 1e-05, %v516_v39 }
 0x2c0   : > { %800 = vrsqrt.f32 %v517_v40 }
 0x2ca   : > { %v801_v42 = vpop.eup %800 }
 0x2cb   : > { %v520_v43 = vmul.f32 %v801_v42, %v519_v41 }
 0x2cd   : > { %526 = vperm.xlu0 %797, %v520_v43   ;;  %v522_v45 = vmul.f32 %v520_v43, %v509_v32 }
 0x2cf   : > { %v523_v46 = vsub.f32 %v521_v44, %v522_v45 }
 0x2d1   : > { %532 = vperm.xlu1 %798, %v523_v46  }
 0x34c   : > { %v527_v47 = vpop.permute.xlu0 %526 }
 0x34d   : > { %v529_v48 = vmul.f32 %v527_v47, %v496_v28 }
 0x350   : > { %v533_v49 = vpop.permute.xlu1 %532 }
 0x351   : > { %v535_v50 = vadd.f32 %v533_v49, %v529_v48 }
 0x353   : > { %v536_v51 = vmul.f32 0.2, %v535_v50 }
 0x355   : > { %v537_v52 = vmax.f32 %v535_v50, %v536_v51 }
 0x357   : > { %v538_v53 = vpack.c.bf16 %v537_v52, %v537_v52 }
 0x359   : > { %540 = vst.msk [vmem:[%s279_s10] sm:$0xf] %vm539_vm3, %v538_v53 }
 0x35a   : > { %843 = shalt.err (!%p840_p6)
}
 0x35b   : > { %s844_s27 = scalar_lea.hbm %s1070_s15, 64  ;;  %s848_s12 = scalar_lea.hbm %s1122_s5, 128 }
 0x35c   : > { %p845_p7 = scmp.ne.s32.totalorder %s1070_s15, %s844_s27  ;;  %p849_p0 = scmp.lt.u32.totalorder %s1070_s15, %s1122_s5 }
 0x35d   : > { %p850_p2 = scmp.lt.u32.totalorder %s848_s12, %s844_s27  ;;  %p852_p8 = scmp.lt.u32.totalorder %s844_s27, %s1070_s15 }
 0x35e   : > { %p846_p9 = pnand %p845_p7, %p1134_p10 }
 0x35f   : > { %p851_p4 = por %p850_p2, %p849_p0 }
 0x360   : > { %p847_p12 = pneg %p846_p9 }
 0x361   : > { %p853_p11 = por %p852_p8, %p851_p4 }
 0x363   : > { %p854_p13 = pnand %p853_p11, %p847_p12 }
 0x365   : > { %857 = shalt.err (!%p854_p13)
}
 0x366   : > { %727 = dma.vmem_to_hbm [thread:$0]  (%p1134_p10), %s1072_s13, 64, %s1070_s15, %s542_s16  }
 0x367 PF: > { %p739_p1 = scmp.ge.s32.totalorder %s912_s23, 2  ;;  %s568_s10 = sand.u32 1, %s892_s18  }
 0x368   : > { %p1135_p3 = scmp.ne.s32.totalorder %s1128_s30, 0  ;;  %s569_s14 = scalar_lea.sflag [#allocation4], %s568_s10 }
 0x36a   : > { %p734_p5 = pnand %p739_p1, %p1135_p3 }
 0x36c   : > { %887 = dma.done.wait (!%p734_p5), %s569_s14, 64  }
 0x36d   : > { %889 = vsyncadd (!%p734_p5), %s569_s14, 4294967232  ;;  %s19_s23 = sadd.s32 1, %s912_s23   ;;  %s1136_s18 = smov %s896_s19 }
 0x36e   : > { %p16_p6 = scmp.ge.s32.totalorder %s19_s23, 4   ;;  %s1137_s19 = smov %s900_s20 }
 0x36f   : > { %s1138_s20 = smov %s1007_s6  ;;  %s1139_s21 = smov %s908_s22 }
 0x370   : > { %s1140_s22 = smov %s1142_s26  ;;  %18 = sbr.rel (!%p16_p6) target bundleno = 5 (0x5), region = 90 }
 0x377   :  { %574 = vsyncpa [#allocation3], 1 }
 0x378   :  { %576 = vsyncpa [#allocation3 + $0x1], 1 }
 0x379   :  { %577 = vsyncpa [#allocation4], 1 }
 0x37a   :  { %579 = vsyncpa [#allocation4 + $0x1], 1 }

</bundles_post_ra>
